<compile_context>
chip_gen: v5e
topology: v5e:2x2
jax: 0.10.0
libtpu: 0.0.40
codegen_flags: <defaults>
</compile_context>

<pallas_src>
import jax
import jax.numpy as jnp
from jax import lax
from jax.experimental import pallas as pl
from jax.experimental.pallas import tpu as pltpu

# ---------------- problem sizes (small, consistent with the module) ----------
VIEWS = 2                      # the two SimCLR views x1, x2
B, C, H, W = 2, 4, 16, 16      # batch, channels, spatial
K = 3                          # conv kernel
F = 32                         # prev_dim (encoder feature width)
HIDDEN = 32                    # config.SSL.SETTING.HIDDEN_DIM
DIM = 32                       # config.SSL.SETTING.DIM
HWN = H * W                    # 256 spatial positions per image
NIMG = VIEWS * B               # 4 images total (both views)
CKK = C * K * K                # 36 im2col features per row
DIM_PAD = 128                  # lane-dense padded output width
EPS = 1e-12                    # torch F.normalize default eps

# bf16 MXU operands are the scale-up knob on v6e/v7x (accumulation stays f32);
# kept f32 here for exact parity with the f32 reference at toy size.
MXU_DTYPE = jnp.float32


# ------------------------------- Pallas kernel --------------------------------
def simclr_kernel(col_ref, wc_ref, bc_ref, w1_ref, b1_ref, w2_ref, b2_ref,
                  out_ref):
    # One image per grid step (grid is "parallel" over the 2*B images).
    # col_ref : [HWN, CKK]      im2col rows for this image (SAME pad baked in)
    # wc_ref  : [CKK, F]        conv weights as one im2col matrix
    # bc_ref  : [1, F]
    # w1_ref  : [F, HIDDEN]     b1_ref: [1, HIDDEN]
    # w2_ref  : [HIDDEN, DIM_PAD] (zero-padded lanes)  b2_ref: [1, DIM_PAD]
    # out_ref : [1, 1, DIM_PAD]

    # Conv2d(C, F, 3, padding=1) + ReLU: a single MXU matmul, f32 accumulate.
    feat = jnp.dot(col_ref[...].astype(MXU_DTYPE),
                   wc_ref[...].astype(MXU_DTYPE),
                   preferred_element_type=jnp.float32)          # [HWN, F]
    feat = jnp.maximum(feat + bc_ref[...], 0.0)

    # Global average pool as one MXU matmul: [1, HWN] @ [HWN, F].
    pool = jnp.full((1, HWN), 1.0 / HWN, jnp.float32)
    g = jnp.dot(pool, feat, preferred_element_type=jnp.float32)  # [1, F]

    # Projection MLP head: Linear -> ReLU -> Linear (last Linear lane-padded).
    z = jnp.dot(g.astype(MXU_DTYPE), w1_ref[...].astype(MXU_DTYPE),
                preferred_element_type=jnp.float32) + b1_ref[...]
    z = jnp.maximum(z, 0.0)                                      # [1, HIDDEN]
    z = jnp.dot(z.astype(MXU_DTYPE), w2_ref[...].astype(MXU_DTYPE),
                preferred_element_type=jnp.float32) + b2_ref[...]  # [1, DIM_PAD]

    # L2 normalize: z / max(||z||, eps) == z * rsqrt(max(ss, eps^2)).
    # Padded lanes of z are exact zeros, so they do not affect the norm.
    ss = jnp.sum(z * z, axis=-1, keepdims=True)
    out_ref[0] = z * lax.rsqrt(jnp.maximum(ss, EPS * EPS))


# ------------------------------- JAX glue -------------------------------------
def _im2col(x):
    # x: [NIMG, C, H, W] -> [NIMG*H*W, C*K*K] with SAME (pad=1) baked in.
    xp = jnp.pad(x, ((0, 0), (0, 0), (1, 1), (1, 1)))
    taps = [xp[:, :, i:i + H, j:j + W] for i in range(K) for j in range(K)]
    col = jnp.stack(taps, axis=-1)                 # [N, C, H, W, K*K]
    col = jnp.transpose(col, (0, 2, 3, 1, 4))      # [N, H, W, C, K*K]
    return col.reshape(NIMG * HWN, CKK)


@jax.jit
def simclr_forward(x1, x2, params):
    wcol, bconv, w1, b1, w2p, b2p = params

    # Both views fused on the image axis: images 0..B-1 = view 1, B..2B-1 = view 2.
    x = jnp.concatenate([x1, x2], axis=0)          # [NIMG, C, H, W]
    col = _im2col(x)                               # [NIMG*HWN, CKK]  (lane-dense)

    out = pl.pallas_call(
        simclr_kernel,
        out_shape=jax.ShapeDtypeStruct((NIMG, 1, DIM_PAD), jnp.float32),
        grid=(NIMG,),
        in_specs=[
            pl.BlockSpec((HWN, CKK), lambda n: (n, 0)),        # this image's rows
            pl.BlockSpec((CKK, F), lambda n: (0, 0)),          # weights resident
            pl.BlockSpec((1, F), lambda n: (0, 0)),
            pl.BlockSpec((F, HIDDEN), lambda n: (0, 0)),
            pl.BlockSpec((1, HIDDEN), lambda n: (0, 0)),
            pl.BlockSpec((HIDDEN, DIM_PAD), lambda n: (0, 0)),
            pl.BlockSpec((1, DIM_PAD), lambda n: (0, 0)),
        ],
        out_specs=pl.BlockSpec((1, 1, DIM_PAD), lambda n: (n, 0, 0)),
        compiler_params=pltpu.CompilerParams(
            dimension_semantics=("parallel",)),   # independent images -> v7x 2 TCs
    )(col, wcol, bconv, w1, b1, w2p, b2p)

    z = out.reshape(NIMG, DIM_PAD)[:, :DIM]
    return z[:B], z[B:]                            # (f1, f2)


# Pure-JAX reference (no Pallas) for a correctness sanity check.
def reference_forward(x, w_oihw, bconv, w1, b1, w2, b2):
    y = lax.conv_general_dilated(
        x, w_oihw, window_strides=(1, 1), padding="SAME",
        dimension_numbers=("NCHW", "OIHW", "NCHW"),
        precision=lax.Precision.HIGHEST)
    y = jnp.maximum(y + bconv[None, :, None, None], 0.0)
    g = jnp.mean(y, axis=(2, 3))                                   # [B, F]
    z = jnp.maximum(jnp.dot(g, w1, precision=lax.Precision.HIGHEST) + b1, 0.0)
    z = jnp.dot(z, w2, precision=lax.Precision.HIGHEST) + b2       # [B, DIM]
    nrm = jnp.sqrt(jnp.sum(z * z, axis=-1, keepdims=True))
    return z / jnp.maximum(nrm, EPS)


if __name__ == "__main__":
    key = jax.random.PRNGKey(0)
    k_x1, k_x2, k_wc, k_bc, k_w1, k_b1, k_w2, k_b2 = jax.random.split(key, 8)

    x1 = jax.random.normal(k_x1, (B, C, H, W), jnp.float32)
    x2 = jax.random.normal(k_x2, (B, C, H, W), jnp.float32)

    # Deterministic parameter init (synthetic; no checkpoint load).
    w_oihw = jax.random.normal(k_wc, (F, C, K, K), jnp.float32) * (1.0 / (C * K * K) ** 0.5)
    bconv = jax.random.normal(k_bc, (F,), jnp.float32) * 0.01
    w1 = jax.random.normal(k_w1, (F, HIDDEN), jnp.float32) * (1.0 / F ** 0.5)
    b1 = jax.random.normal(k_b1, (HIDDEN,), jnp.float32) * 0.01
    w2 = jax.random.normal(k_w2, (HIDDEN, DIM), jnp.float32) * (1.0 / HIDDEN ** 0.5)
    b2 = jax.random.normal(k_b2, (DIM,), jnp.float32) * 0.01

    # Conv weight as a single im2col matrix:
    #   wcol[c*K*K + i*K + j, f] = w_oihw[f, c, i, j]
    wcol = jnp.transpose(w_oihw, (1, 2, 3, 0)).reshape(CKK, F)
    # Lane-pad the final Linear to DIM_PAD (padded lanes are exact zeros).
    w2p = jnp.zeros((HIDDEN, DIM_PAD), jnp.float32).at[:, :DIM].set(w2)
    b2p = jnp.zeros((1, DIM_PAD), jnp.float32).at[:, :DIM].set(b2)

    params = (wcol, bconv.reshape(1, F), w1, b1.reshape(1, HIDDEN), w2p, b2p)

    f1, f2 = simclr_forward(x1, x2, params)
    jax.block_until_ready((f1, f2))

    # Sanity check against a pure-JAX reference.
    r1 = reference_forward(x1, w_oihw, bconv, w1, b1, w2, b2)
    r2 = reference_forward(x2, w_oihw, bconv, w1, b1, w2, b2)
    assert f1.shape == (B, DIM) and f2.shape == (B, DIM)
    assert jnp.allclose(f1, r1, atol=1e-4, rtol=1e-4)
    assert jnp.allclose(f2, r2, atol=1e-4, rtol=1e-4)

    print("KERNEL_OK")
</pallas_src>

<mosaic_0001>
module attributes {stable_mosaic.version = 11 : i64} {
  func.func @simclr_kernel(%arg0: i32, %arg1: memref<256x36xf32, #tpu.memory_space<vmem>>, %arg2: memref<36x32xf32, #tpu.memory_space<vmem>>, %arg3: memref<1x32xf32, #tpu.memory_space<vmem>>, %arg4: memref<32x32xf32, #tpu.memory_space<vmem>>, %arg5: memref<1x32xf32, #tpu.memory_space<vmem>>, %arg6: memref<32x128xf32, #tpu.memory_space<vmem>>, %arg7: memref<1x128xf32, #tpu.memory_space<vmem>>, %arg8: memref<1x1x128xf32, #tpu.memory_space<vmem>>) attributes {dimension_semantics = [#tpu.dimension_semantics<parallel>], iteration_bounds = array<i64: 4>, scalar_prefetch = 0 : i64, scratch_operands = 0 : i64, tpu.core_type = #tpu.core_type<tc>, window_params = [{transform_indices = @transform_0, window_bounds = array<i64: 256, 36>}, {pipeline_mode = #tpu.pipeline_mode<synchronous>, transform_indices = @transform_1, window_bounds = array<i64: 36, 32>}, {pipeline_mode = #tpu.pipeline_mode<synchronous>, transform_indices = @transform_2, window_bounds = array<i64: 1, 32>}, {pipeline_mode = #tpu.pipeline_mode<synchronous>, transform_indices = @transform_3, window_bounds = array<i64: 32, 32>}, {pipeline_mode = #tpu.pipeline_mode<synchronous>, transform_indices = @transform_4, window_bounds = array<i64: 1, 32>}, {pipeline_mode = #tpu.pipeline_mode<synchronous>, transform_indices = @transform_5, window_bounds = array<i64: 32, 128>}, {pipeline_mode = #tpu.pipeline_mode<synchronous>, transform_indices = @transform_6, window_bounds = array<i64: 1, 128>}, {transform_indices = @transform_7, window_bounds = array<i64: 1, 1, 128>}]} {
    %c0 = arith.constant 0 : index
    %c0_0 = arith.constant 0 : index
    %0 = vector.load %arg1[%c0, %c0_0] : memref<256x36xf32, #tpu.memory_space<vmem>>, vector<256x36xf32>
    %c0_1 = arith.constant 0 : index
    %c0_2 = arith.constant 0 : index
    %1 = vector.load %arg2[%c0_1, %c0_2] : memref<36x32xf32, #tpu.memory_space<vmem>>, vector<36x32xf32>
    %cst = arith.constant dense<0.000000e+00> : vector<256x32xf32>
    %2 = tpu.matmul %0, %1, %cst {dimension_numbers = #tpu.dot_dimension_numbers<[1], [0], [0], [1], [0, 0, 1, 1], [], []>} : vector<256x36xf32>, vector<36x32xf32>, vector<256x32xf32> -> vector<256x32xf32>
    %c0_3 = arith.constant 0 : index
    %c0_4 = arith.constant 0 : index
    %3 = vector.load %arg3[%c0_3, %c0_4] : memref<1x32xf32, #tpu.memory_space<vmem>>, vector<1x32xf32>
    %4 = vector.broadcast %3 : vector<1x32xf32> to vector<256x32xf32>
    %5 = arith.addf %2, %4 : vector<256x32xf32>
    %cst_5 = arith.constant 0.000000e+00 : f32
    %6 = vector.broadcast %cst_5 : f32 to vector<256x32xf32>
    %7 = arith.maximumf %5, %6 : vector<256x32xf32>
    %cst_6 = arith.constant 3.906250e-03 : f32
    %8 = vector.broadcast %cst_6 : f32 to vector<1x256xf32>
    %cst_7 = arith.constant dense<0.000000e+00> : vector<1x32xf32>
    %9 = tpu.matmul %8, %7, %cst_7 {dimension_numbers = #tpu.dot_dimension_numbers<[1], [0], [0], [1], [0, 0, 1, 1], [], []>} : vector<1x256xf32>, vector<256x32xf32>, vector<1x32xf32> -> vector<1x32xf32>
    %c0_8 = arith.constant 0 : index
    %c0_9 = arith.constant 0 : index
    %10 = vector.load %arg4[%c0_8, %c0_9] : memref<32x32xf32, #tpu.memory_space<vmem>>, vector<32x32xf32>
    %cst_10 = arith.constant dense<0.000000e+00> : vector<1x32xf32>
    %11 = tpu.matmul %9, %10, %cst_10 {dimension_numbers = #tpu.dot_dimension_numbers<[1], [0], [0], [1], [0, 0, 1, 1], [], []>} : vector<1x32xf32>, vector<32x32xf32>, vector<1x32xf32> -> vector<1x32xf32>
    %c0_11 = arith.constant 0 : index
    %c0_12 = arith.constant 0 : index
    %12 = vector.load %arg5[%c0_11, %c0_12] : memref<1x32xf32, #tpu.memory_space<vmem>>, vector<1x32xf32>
    %13 = arith.addf %11, %12 : vector<1x32xf32>
    %cst_13 = arith.constant 0.000000e+00 : f32
    %14 = vector.broadcast %cst_13 : f32 to vector<1x32xf32>
    %15 = arith.maximumf %13, %14 : vector<1x32xf32>
    %c0_14 = arith.constant 0 : index
    %c0_15 = arith.constant 0 : index
    %16 = vector.load %arg6[%c0_14, %c0_15] : memref<32x128xf32, #tpu.memory_space<vmem>>, vector<32x128xf32>
    %cst_16 = arith.constant dense<0.000000e+00> : vector<1x128xf32>
    %17 = tpu.matmul %15, %16, %cst_16 {dimension_numbers = #tpu.dot_dimension_numbers<[1], [0], [0], [1], [0, 0, 1, 1], [], []>} : vector<1x32xf32>, vector<32x128xf32>, vector<1x128xf32> -> vector<1x128xf32>
    %c0_17 = arith.constant 0 : index
    %c0_18 = arith.constant 0 : index
    %18 = vector.load %arg7[%c0_17, %c0_18] : memref<1x128xf32, #tpu.memory_space<vmem>>, vector<1x128xf32>
    %19 = arith.addf %17, %18 : vector<1x128xf32>
    %20 = arith.mulf %19, %19 : vector<1x128xf32>
    %cst_19 = arith.constant dense<0.000000e+00> : vector<1xf32>
    %21 = vector.multi_reduction <add>, %20, %cst_19 [1] : vector<1x128xf32> to vector<1xf32>
    %22 = vector.shape_cast %21 : vector<1xf32> to vector<1x1xf32>
    %cst_20 = arith.constant 1.000000e-24 : f32
    %23 = vector.broadcast %cst_20 : f32 to vector<1x1xf32>
    %24 = arith.maximumf %22, %23 : vector<1x1xf32>
    %25 = math.rsqrt %24 : vector<1x1xf32>
    %26 = vector.broadcast %25 : vector<1x1xf32> to vector<1x128xf32>
    %27 = arith.mulf %19, %26 : vector<1x128xf32>
    %c0_21 = arith.constant 0 : index
    %c0_22 = arith.constant 0 : index
    %c0_23 = arith.constant 0 : index
    %28 = vector.load %arg8[%c0_21, %c0_22, %c0_23] : memref<1x1x128xf32, #tpu.memory_space<vmem>>, vector<1x1x128xf32>
    %29 = vector.shape_cast %28 : vector<1x1x128xf32> to vector<1x128xf32>
    %30 = vector.shape_cast %27 : vector<1x128xf32> to vector<1x1x128xf32>
    tpu.vector_store %arg8[%c0_21, %c0_22, %c0_23], %30 {strides = array<i32>} : memref<1x1x128xf32, #tpu.memory_space<vmem>>, vector<1x1x128xf32>,
    return
  }
  func.func @transform_0(%arg0: i32) -> (i32, i32) {
    %c0_i32 = arith.constant 0 : i32
    %c0_i32_0 = arith.constant 0 : i32
    return %arg0, %c0_i32 : i32, i32
  }
  func.func @transform_1(%arg0: i32) -> (i32, i32) {
    %c0_i32 = arith.constant 0 : i32
    %c0_i32_0 = arith.constant 0 : i32
    %c0_i32_1 = arith.constant 0 : i32
    return %c0_i32, %c0_i32_0 : i32, i32
  }
  func.func @transform_2(%arg0: i32) -> (i32, i32) {
    %c0_i32 = arith.constant 0 : i32
    %c0_i32_0 = arith.constant 0 : i32
    %c0_i32_1 = arith.constant 0 : i32
    return %c0_i32, %c0_i32_0 : i32, i32
  }
  func.func @transform_3(%arg0: i32) -> (i32, i32) {
    %c0_i32 = arith.constant 0 : i32
    %c0_i32_0 = arith.constant 0 : i32
    %c0_i32_1 = arith.constant 0 : i32
    return %c0_i32, %c0_i32_0 : i32, i32
  }
  func.func @transform_4(%arg0: i32) -> (i32, i32) {
    %c0_i32 = arith.constant 0 : i32
    %c0_i32_0 = arith.constant 0 : i32
    %c0_i32_1 = arith.constant 0 : i32
    return %c0_i32, %c0_i32_0 : i32, i32
  }
  func.func @transform_5(%arg0: i32) -> (i32, i32) {
    %c0_i32 = arith.constant 0 : i32
    %c0_i32_0 = arith.constant 0 : i32
    %c0_i32_1 = arith.constant 0 : i32
    return %c0_i32, %c0_i32_0 : i32, i32
  }
  func.func @transform_6(%arg0: i32) -> (i32, i32) {
    %c0_i32 = arith.constant 0 : i32
    %c0_i32_0 = arith.constant 0 : i32
    %c0_i32_1 = arith.constant 0 : i32
    return %c0_i32, %c0_i32_0 : i32, i32
  }
  func.func @transform_7(%arg0: i32) -> (i32, i32, i32) {
    %c0_i32 = arith.constant 0 : i32
    %c0_i32_0 = arith.constant 0 : i32
    %c0_i32_1 = arith.constant 0 : i32
    return %arg0, %c0_i32, %c0_i32_0 : i32, i32, i32
  }
}

</mosaic_0001>

<bundles_post_ra>
// kernel: simclr_forward.1
= control target key start
LH: loop header
LB: loop body
LE: loop exit
PB: predicated region body
PF: predicated region fallthrough
CT: control target
= control target key end

     0   :  { %s847_s24 = smov 0   ;;  %s1044_s0 = inlined_call_operand.vmem [shape: f32[1024,36], index: 0, kind: input, shape index: {}]   ;;  %s1045_s1 = inlined_call_operand.vmem [shape: f32[36,32], index: 1, kind: input, shape index: {}]   ;;  %s1046_s2 = inlined_call_operand.vmem [shape: f32[1,32], index: 2, kind: input, shape index: {}]   ;;  %s1047_s3 = inlined_call_operand.vmem [shape: f32[32,32], index: 3, kind: input, shape index: {}]   ;;  %s1048_s4 = inlined_call_operand.vmem [shape: f32[1,32], index: 4, kind: input, shape index: {}]   ;;  %s1049_s5 = inlined_call_operand.vmem [shape: f32[32,128], index: 5, kind: input, shape index: {}]   ;;  %s1050_s6 = inlined_call_operand.vmem [shape: f32[1,128], index: 6, kind: input, shape index: {}]   ;;  %s1051_s7 = inlined_call_operand.vmem [shape: f32[4,1,128], index: 7, kind: output, shape index: {}]  }
   0x1 LB: > { %s853_s25 = sadd.s32 4294967295, %s804_s24   ;;  %p731_p0 = scmp.ge.s32.totalorder %s804_s24, 1  ;;  %s804_s24 = sphi %s847_s24, %s17_s24  }
   0x2   : > { %p238_p1 = scmp.lt.s32.totalorder %s804_s24, 5 }
   0x4   : > { %p239_p2 = pnand %p731_p0, %p238_p1 }
   0x5   : > { %s732_s30 = sshll.u32 (!%p239_p2), %s853_s25, 5  ;;  %p274_p4 = scmp.lt.s32.totalorder (!%p239_p2), %s853_s25, 3 }
   0x6   : > { %242 = sbr.rel (%p239_p2) target bundleno = 792 (0x318), region = 48  ;;  %p269_p3 = scmp.lt.s32.totalorder (!%p239_p2), %s732_s30, 127 }
   0xb   : > { %v313_v0 = vld [vmem:[%s1045_s1 + $0x20] sm:$0xf]  ;;  %vm415_vm0 = vcmask 1043456   ;;  %v312_v1 = vld [vmem:[%s1045_s1 + $0x18] sm:$0xff]  ;;  %v311_v2 = vld [vmem:[%s1045_s1 + $0x10] sm:$0xff]  ;;  %s1053_s30 = smov (!%p269_p3, %s732_s30), 127 }
   0xc   : > { %734 = vmatpush.msk.msra.mxu0 %vm415_vm0, %v313_v0  ;;  %771 = vmatpush.msk.msra.mxu1 %vm415_vm0, %v313_v0  ;;  %v310_v3 = vld [vmem:[%s1045_s1 + $0x8] sm:$0xff]  ;;  %s733_s12 = sshll.u32 %s1053_s30, 3  ;;  %v309_v4 = vld [vmem:[%s1045_s1] sm:$0xff]  ;;  %vm318_vm1 = vcmask 293888   ;;  %vm609_vm2 = vcmask 261120   ;;  %vm663_vm3 = vcmask 1040384  }
   0xd   : > { %773 = vmatpush.msk.msra.mxu3 %vm415_vm0, %v313_v0  ;;  %772 = vmatpush.msk.msra.mxu2 %vm415_vm0, %v313_v0  ;;  %s876_s17 = scalar_lea.vmem %s1044_s0, %s733_s12  ;;  %v955_v48 = vld [vmem:[%s1046_s2] ss:$0 sm:$0xff]  ;;  %s1055_s25 = smov (!%p274_p4, %s853_s25), 3 }
   0xe   : > { %431 = vmatpush.msra.mxu0 %v312_v1  ;;  %774 = vmatpush.msra.mxu1 %v312_v1  ;;  %v277_v5 = vld [vmem:[%s876_s17] sm:$0xff]  ;;  %v288_v6 = vld [vmem:[%s876_s17 + $0x58] sm:$0xff]  ;;  %v278_v8 = vld [vmem:[%s876_s17 + $0x8] sm:$0xff]  ;;  %s276_s21 = scalar_lea.vmem %s1051_s7, %s1055_s25 }
   0xf   : > { %776 = vmatpush.msra.mxu3 %v312_v1  ;;  %775 = vmatpush.msra.mxu2 %v312_v1  ;;  %v301_v7 = vld [vmem:[%s876_s17 + $0xc0] sm:$0xff]  ;;  %v302_v10 = vld [vmem:[%s876_s17 + $0xc8] sm:$0xff]  ;;  %v296_v11 = vld [vmem:[%s876_s17 + $0x98] sm:$0xff] }
  0x10   : > { %432 = vmatpush.msra.mxu0 %v311_v2  ;;  %777 = vmatpush.msra.mxu1 %v311_v2  ;;  %v289_v9 = vld [vmem:[%s876_s17 + $0x60] sm:$0xff]  ;;  %v279_v12 = vld [vmem:[%s876_s17 + $0x10] sm:$0xff]  ;;  %v290_v13 = vld [vmem:[%s876_s17 + $0x68] sm:$0xff] }
  0x11   : > { %779 = vmatpush.msra.mxu3 %v311_v2  ;;  %778 = vmatpush.msra.mxu2 %v311_v2  ;;  %v303_v14 = vld [vmem:[%s876_s17 + $0xd0] sm:$0xff]  ;;  %v297_v15 = vld [vmem:[%s876_s17 + $0xa0] sm:$0xff]  ;;  %v280_v16 = vld [vmem:[%s876_s17 + $0x18] sm:$0xff] }
  0x12   : > { %433 = vmatpush.msra.mxu0 %v310_v3  ;;  %780 = vmatpush.msra.mxu1 %v310_v3  ;;  %v291_v17 = vld [vmem:[%s876_s17 + $0x70] sm:$0xff]  ;;  %v304_v18 = vld [vmem:[%s876_s17 + $0xd8] sm:$0xff]  ;;  %v298_v19 = vld [vmem:[%s876_s17 + $0xa8] sm:$0xff] }
  0x13   : > { %782 = vmatpush.msra.mxu3 %v310_v3  ;;  %781 = vmatpush.msra.mxu2 %v310_v3  ;;  %v281_v20 = vld [vmem:[%s876_s17 + $0x20] sm:$0xff]  ;;  %v292_v21 = vld [vmem:[%s876_s17 + $0x78] sm:$0xff]  ;;  %v299_v23 = vld [vmem:[%s876_s17 + $0xb0] sm:$0xff] }
  0x14   : > { %434 = vmatpush.msra.mxu0 %v309_v4  ;;  %783 = vmatpush.msra.mxu1 %v309_v4  ;;  %v305_v22 = vld [vmem:[%s876_s17 + $0xe0] sm:$0xff]  ;;  %v282_v24 = vld [vmem:[%s876_s17 + $0x28] sm:$0xff]  ;;  %v300_v26 = vld [vmem:[%s876_s17 + $0xb8] sm:$0xff] }
  0x15   : > { %785 = vmatpush.msra.mxu3 %v309_v4  ;;  %735 = vmatmul.msk.f32.vlgmr.msra.gmra.mxu0 %vm318_vm1, %v277_v5  ;;  %v306_v25 = vld [vmem:[%s876_s17 + $0xe8] sm:$0xff]  ;;  %v293_v27 = vld [vmem:[%s876_s17 + $0x80] sm:$0xff]  ;;  %v283_v28 = vld [vmem:[%s876_s17 + $0x30] sm:$0xff] }
  0x16   : > { %746 = vmatmul.msk.f32.vlgmr.msra.gmra.mxu1 %vm318_vm1, %v288_v6  ;;  %759 = vmatmul.msk.f32.vlgmr.msra.gmra.mxu3 %vm318_vm1, %v301_v7  ;;  %v307_v29 = vld [vmem:[%s876_s17 + $0xf0] sm:$0xff]  ;;  %v294_v30 = vld [vmem:[%s876_s17 + $0x88] sm:$0xff]  ;;  %v284_v31 = vld [vmem:[%s876_s17 + $0x38] sm:$0xff] }
  0x17   : > { %784 = vmatpush.msra.mxu2 %v309_v4  ;;  %v308_v32 = vld [vmem:[%s876_s17 + $0xf8] sm:$0xff]  ;;  %v295_v33 = vld [vmem:[%s876_s17 + $0x90] sm:$0xff]  ;;  %v285_v34 = vld [vmem:[%s876_s17 + $0x40] sm:$0xff] }
  0x18   : > { %754 = vmatmul.msk.f32.vlgmr.msra.gmra.mxu2 %vm318_vm1, %v296_v11  ;;  %v286_v35 = vld [vmem:[%s876_s17 + $0x48] sm:$0xff]  ;;  %v287_v36 = vld [vmem:[%s876_s17 + $0x50] sm:$0xff] }
  0x1d   : > { %736 = vmatmul.msk.f32.gmra.mxu0 %vm318_vm1, %v278_v8 }
  0x1e   : > { %747 = vmatmul.msk.f32.gmra.mxu1 %vm318_vm1, %v289_v9  ;;  %760 = vmatmul.msk.f32.gmra.mxu3 %vm318_vm1, %v302_v10 }
  0x20   : > { %755 = vmatmul.msk.f32.gmra.mxu2 %vm318_vm1, %v297_v15 }
  0x25   : > { %737 = vmatmul.msk.f32.gmra.mxu0 %vm318_vm1, %v279_v12 }
  0x26   : > { %748 = vmatmul.msk.f32.gmra.mxu1 %vm318_vm1, %v290_v13  ;;  %761 = vmatmul.msk.f32.gmra.mxu3 %vm318_vm1, %v303_v14 }
  0x28   : > { %756 = vmatmul.msk.f32.gmra.mxu2 %vm318_vm1, %v298_v19 }
  0x2d   : > { %738 = vmatmul.msk.f32.gmra.mxu0 %vm318_vm1, %v280_v16 }
  0x2e   : > { %749 = vmatmul.msk.f32.gmra.mxu1 %vm318_vm1, %v291_v17  ;;  %762 = vmatmul.msk.f32.gmra.mxu3 %vm318_vm1, %v304_v18 }
  0x30   : > { %757 = vmatmul.msk.f32.gmra.mxu2 %vm318_vm1, %v299_v23 }
  0x35   : > { %739 = vmatmul.msk.f32.gmra.mxu0 %vm318_vm1, %v281_v20 }
  0x36   : > { %750 = vmatmul.msk.f32.gmra.mxu1 %vm318_vm1, %v292_v21  ;;  %763 = vmatmul.msk.f32.gmra.mxu3 %vm318_vm1, %v305_v22 }
  0x38   : > { %758 = vmatmul.msk.f32.gmra.mxu2 %vm318_vm1, %v300_v26  ;;  %v607_v26 = vld [vmem:[%s1047_s3 + $0x18] sm:$0xff] }
  0x39   : > { %625 = vmatpush.msrb.mxu3 %v607_v26 }
  0x3d   : > { %740 = vmatmul.msk.f32.gmra.mxu0 %vm318_vm1, %v282_v24 }
  0x3e   : > { %764 = vmatmul.msk.f32.gmra.mxu3 %vm318_vm1, %v306_v25  ;;  %751 = vmatmul.msk.f32.gmra.mxu1 %vm318_vm1, %v293_v27  ;;  %v606_v27 = vld [vmem:[%s1047_s3 + $0x10] sm:$0xff] }
  0x3f   : > { %626 = vmatpush.msrb.mxu3 %v606_v27 }
  0x45   : > { %741 = vmatmul.msk.f32.gmra.mxu0 %vm318_vm1, %v283_v28 }
  0x46   : > { %765 = vmatmul.msk.f32.gmra.mxu3 %vm318_vm1, %v307_v29  ;;  %752 = vmatmul.msk.f32.gmra.mxu1 %vm318_vm1, %v294_v30 }
  0x4d   : > { %742 = vmatmul.msk.f32.gmra.mxu0 %vm318_vm1, %v284_v31  ;;  %v605_v31 = vld [vmem:[%s1047_s3 + $0x8] sm:$0xff] }
  0x4e   : > { %766 = vmatmul.msk.f32.gmra.mxu3 %vm318_vm1, %v308_v32  ;;  %753 = vmatmul.msk.f32.gmra.mxu1 %vm318_vm1, %v295_v33 }
  0x4f   : > { %627 = vmatpush.msrb.mxu3 %v605_v31 }
  0x55   : > { %743 = vmatmul.msk.f32.gmra.mxu0 %vm318_vm1, %v285_v34 }
  0x5d   : > { %744 = vmatmul.msk.f32.gmra.mxu0 %vm318_vm1, %v286_v35 }
  0x65   : > { %745 = vmatmul.msk.f32.gmra.mxu0 %vm318_vm1, %v287_v36 }
  0x92   : > { %v942_v37 = vpop.f32.mrf.mxu0 }
  0x93   : > { %v469_v38 = vpop.f32.mrf.mxu1 }
  0x94   : > { %v470_v61 = vadd.f32 %v955_v48, %v469_v38 }
  0x96   : > { %v543_v1 = vmax.f32 %v470_v61, 0.0 }
  0x99   : > { %v944_v39 = vpop.f32.mrf.mxu3 }
  0x9a   : > { %v946_v40 = vpop.f32.mrf.mxu0  ;;  %v509_v28 = vadd.f32 %v955_v48, %v944_v39 }
  0x9b   : > { %v472_v41 = vpop.f32.mrf.mxu1  ;;  %v960_v52 = vpop.f32.mrf.mxu2 }
  0x9c   : > { %v473_v56 = vadd.f32 %v955_v48, %v472_v41  ;;  %v556_v33 = vmax.f32 %v509_v28, 0.0 }
  0x9e   : > { %v544_v62 = vmax.f32 %v473_v56, 0.0 }
  0xa1   : > { %v511_v42 = vpop.f32.mrf.mxu3 }
  0xa2   : > { %v948_v43 = vpop.f32.mrf.mxu0  ;;  %v512_v24 = vadd.f32 %v955_v48, %v511_v42 }
  0xa3   : > { %v475_v44 = vpop.f32.mrf.mxu1  ;;  %v496_v0 = vpop.f32.mrf.mxu2 }
  0xa4   : > { %v476_v54 = vadd.f32 %v955_v48, %v475_v44  ;;  %v557_v32 = vmax.f32 %v512_v24, 0.0 }
  0xa6   : > { %v545_v59 = vmax.f32 %v476_v54, 0.0  ;;  %v494_v54 = vadd.f32 %v955_v48, %v960_v52 }
  0xa9   : > { %v514_v45 = vpop.f32.mrf.mxu3 }
  0xaa   : > { %v950_v46 = vpop.f32.mrf.mxu0  ;;  %v515_v19 = vadd.f32 %v955_v48, %v514_v45 }
  0xab   : > { %v478_v47 = vpop.f32.mrf.mxu1  ;;  %v499_v4 = vpop.f32.mrf.mxu2 }
  0xac   : > { %v479_v50 = vadd.f32 %v955_v48, %v478_v47  ;;  %v558_v29 = vmax.f32 %v515_v19, 0.0  ;;  %v500_v41 = vadd.f32 %v955_v48, %v499_v4  ;;  %v497_v47 = vadd.f32 %v955_v48, %v496_v0 }
  0xad   : > { %v446_v4 = vadd.f32 %v955_v48, %v950_v46  ;;  %v437_v46 = vadd.f32 %v955_v48, %v942_v37 }
  0xae   : > { %v546_v57 = vmax.f32 %v479_v50, 0.0 }
  0xb1   : > { %v517_v49 = vpop.f32.mrf.mxu3 }
  0xb2   : > { %v958_v51 = vpop.f32.mrf.mxu0  ;;  %v518_v17 = vadd.f32 %v955_v48, %v517_v49 }
  0xb3   : > { %v481_v53 = vpop.f32.mrf.mxu1  ;;  %v502_v7 = vpop.f32.mrf.mxu2 }
  0xb4   : > { %v482_v55 = vadd.f32 %v955_v48, %v481_v53  ;;  %v559_v25 = vmax.f32 %v518_v17, 0.0  ;;  %v503_v34 = vadd.f32 %v955_v48, %v502_v7  ;;  %v634_v17 = vld [vmem:[%s1049_s5] sm:$0xff] }
  0xb6   : > { %v547_v58 = vmax.f32 %v482_v55, 0.0  ;;  %v554_v49 = vmax.f32 %v503_v34, 0.0  ;;  %v553_v55 = vmax.f32 %v500_v41, 0.0 }
  0xb8   : > { %564 = vmatpush.msrb.mxu1 %v547_v58 }
  0xb9   : > { %v520_v60 = vpop.f32.mrf.mxu3 }
  0xba   : > { %565 = vmatpush.msrb.mxu1 %v546_v57  ;;  %v966_v63 = vpop.f32.mrf.mxu0  ;;  %v521_v15 = vadd.f32 %v955_v48, %v520_v60 }
  0xbb   : > { %v968_v9 = vpop.f32.mrf.mxu1  ;;  %v505_v22 = vpop.f32.mrf.mxu2  ;;  %v452_v60 = vadd.f32 %v955_v48, %v966_v63 }
  0xbc   : > { %566 = vmatpush.msrb.mxu1 %v545_v59  ;;  %v560_v20 = vmax.f32 %v521_v15, 0.0  ;;  %v506_v30 = vadd.f32 %v955_v48, %v505_v22  ;;  %v552_v59 = vmax.f32 %v497_v47, 0.0  ;;  %v636_v15 = vld [vmem:[%s1049_s5 + $0x10] sm:$0xff]  ;;  %v638_v22 = vld [vmem:[%s1050_s6] sm:$0x1] }
  0xbd   : > { %v537_v63 = vmax.f32 %v452_v60, 0.0 }
  0xbe   : > { %567 = vmatpush.msrb.mxu1 %v544_v62  ;;  %v555_v35 = vmax.f32 %v506_v30, 0.0  ;;  %v551_v62 = vmax.f32 %v494_v54, 0.0 }
  0xc0   : > { %568 = vmatpush.msrb.mxu1 %v543_v1  ;;  %v449_v1 = vadd.f32 %v955_v48, %v958_v51  ;;  %v440_v51 = vadd.f32 %v955_v48, %v946_v40  ;;  %v604_v40 = vld [vmem:[%s1047_s3] sm:$0xff] }
  0xc1   : > { %v523_v2 = vpop.f32.mrf.mxu3  ;;  %628 = vmatpush.msrb.mxu3 %v604_v40 }
  0xc2   : > { %v454_v3 = vpop.f32.mrf.mxu0  ;;  %v524_v13 = vadd.f32 %v955_v48, %v523_v2  ;;  %v536_v7 = vmax.f32 %v449_v1, 0.0 }
  0xc3   : > { %v487_v23 = vpop.f32.mrf.mxu1  ;;  %v455_v57 = vadd.f32 %v955_v48, %v454_v3  ;;  %v485_v3 = vadd.f32 %v955_v48, %v968_v9 }
  0xc4   : > { %v561_v18 = vmax.f32 %v524_v13, 0.0  ;;  %v488_v0 = vadd.f32 %v955_v48, %v487_v23  ;;  %v637_v13 = vld [vmem:[%s1049_s5 + $0x18] sm:$0xff] }
  0xc5   : > { %v538_v2 = vmax.f32 %v455_v57, 0.0  ;;  %654 = vmatpush.msra.mxu3 %v637_v13 }
  0xc7   : > { %655 = vmatpush.msra.mxu3 %v636_v15 }
  0xc9   : > { %v526_v5 = vpop.f32.mrf.mxu3 }
  0xca   : > { %v457_v6 = vpop.f32.mrf.mxu0  ;;  %v527_v10 = vadd.f32 %v955_v48, %v526_v5  ;;  %v549_v5 = vmax.f32 %v488_v0, 0.0 }
  0xcb   : > { %v490_v45 = vpop.f32.mrf.mxu1  ;;  %v458_v50 = vadd.f32 %v955_v48, %v457_v6  ;;  %v443_v6 = vadd.f32 %v955_v48, %v948_v43  ;;  %v532_v43 = vmax.f32 %v437_v46, 0.0 }
  0xcc   : > { %v562_v16 = vmax.f32 %v527_v10, 0.0  ;;  %v491_v56 = vadd.f32 %v955_v48, %v490_v45  ;;  %v535_v10 = vmax.f32 %v446_v4, 0.0 }
  0xcd   : > { %v539_v61 = vmax.f32 %v458_v50, 0.0  ;;  %v534_v9 = vmax.f32 %v443_v6, 0.0 }
  0xce   : > { %v550_v52 = vmax.f32 %v491_v56, 0.0 }
  0xd1   : > { %v529_v8 = vpop.f32.mrf.mxu3 }
  0xd2   : > { %v530_v11 = vadd.f32 %v955_v48, %v529_v8  ;;  %v460_v12 = vpop.f32.mrf.mxu0  ;;  %v548_v8 = vmax.f32 %v485_v3, 0.0 }
  0xd3   : > { %v461_v42 = vadd.f32 %v955_v48, %v460_v12  ;;  %v533_v12 = vmax.f32 %v440_v51, 0.0 }
  0xd4   : > { %v563_v14 = vmax.f32 %v530_v11, 0.0  ;;  %v806_v11 = vmov 0.00390625  }
  0xd5   : > { %v540_v58 = vmax.f32 %v461_v42, 0.0 }
  0xd6   : > { %584 = vmatpush.msrb.mxu2 %v563_v14 }
  0xd8   : > { %585 = vmatpush.msrb.mxu2 %v562_v16  ;;  %v635_v16 = vld [vmem:[%s1049_s5 + $0x8] sm:$0xff] }
  0xd9   : > { %656 = vmatpush.msra.mxu3 %v635_v16 }
  0xda   : > { %586 = vmatpush.msrb.mxu2 %v561_v18  ;;  %v463_v21 = vpop.f32.mrf.mxu0  ;;  %v608_v18 = vld [vmem:[%s1048_s4] sm:$0x1] }
  0xdb   : > { %v464_v38 = vadd.f32 %v955_v48, %v463_v21  ;;  %657 = vmatpush.msra.mxu3 %v634_v17 }
  0xdc   : > { %587 = vmatpush.msrb.mxu2 %v560_v20 }
  0xdd   : > { %v541_v53 = vmax.f32 %v464_v38, 0.0 }
  0xde   : > { %588 = vmatpush.msrb.mxu2 %v559_v25 }
  0xe0   : > { %589 = vmatpush.msrb.mxu2 %v558_v29 }
  0xe2   : > { %590 = vmatpush.msrb.mxu2 %v557_v32  ;;  %v466_v36 = vpop.f32.mrf.mxu0 }
  0xe3   : > { %v467_v39 = vadd.f32 %v955_v48, %v466_v36 }
  0xe4   : > { %591 = vmatpush.msrb.mxu2 %v556_v33 }
  0xe5   : > { %v542_v44 = vmax.f32 %v467_v39, 0.0 }
  0xe6   : > { %592 = vmatpush.msrb.mxu2 %v555_v35 }
  0xe7   : > { %569 = vmatpush.msrb.mxu1 %v542_v44 }
  0xe8   : > { %593 = vmatpush.msrb.mxu2 %v554_v49 }
  0xe9   : > { %570 = vmatpush.msrb.mxu1 %v541_v53 }
  0xea   : > { %594 = vmatpush.msrb.mxu2 %v553_v55 }
  0xeb   : > { %571 = vmatpush.msrb.mxu1 %v540_v58 }
  0xec   : > { %595 = vmatpush.msrb.mxu2 %v552_v59 }
  0xed   : > { %572 = vmatpush.msrb.mxu1 %v539_v61 }
  0xee   : > { %596 = vmatpush.msrb.mxu2 %v551_v62 }
  0xef   : > { %573 = vmatpush.msrb.mxu1 %v538_v2 }
  0xf0   : > { %597 = vmatpush.msrb.mxu2 %v550_v52 }
  0xf1   : > { %574 = vmatpush.msrb.mxu1 %v537_v63 }
  0xf2   : > { %598 = vmatpush.msrb.mxu2 %v549_v5 }
  0xf3   : > { %575 = vmatpush.msrb.mxu1 %v536_v7 }
  0xf4   : > { %599 = vmatpush.msrb.mxu2 %v548_v8 }
  0xf5   : > { %576 = vmatpush.msrb.mxu1 %v535_v10  ;;  %600 = vmatmul.f32.vlgmr.msrb.gmra.mxu2 %v806_v11 }
  0xf7   : > { %577 = vmatpush.msrb.mxu1 %v534_v9 }
  0xf9   : > { %578 = vmatpush.msrb.mxu1 %v533_v12 }
  0xfb   : > { %579 = vmatpush.msrb.mxu1 %v532_v43 }
  0xfc   : > { %580 = vmatmul.f32.vlgmr.msrb.gmra.mxu1 %v806_v11 }
 0x178   : > { %v601_v37 = vpop.f32.mrf.mxu2 }
 0x179   : > { %v581_v48 = vpop.f32.mrf.mxu1 }
 0x17a   : > { %v602_v14 = vadd.f32 %v601_v37, %v581_v48 }
 0x17c   : > { %767 = vmatmul.msk.f32.vlgmr.msrb.gmra.mxu3 %vm609_vm2, %v602_v14 }
 0x1ff   : > { %v630_v19 = vpop.f32.mrf.mxu3 }
 0x200   : > { %v631_v20 = vadd.f32 %v630_v19, %v608_v18 }
 0x202   : > { %v633_v21 = vmax.f32 %v631_v20, 0.0 }
 0x204   : > { %768 = vmatmul.msk.f32.vlgmr.msra.gmra.mxu3 %vm609_vm2, %v633_v21 }
 0x287   : > { %v659_v23 = vpop.f32.mrf.mxu3 }
 0x288   : > { %v660_v24 = vadd.f32 %v659_v23, %v638_v22 }
 0x28a   : > { %v662_v25 = vmul.f32 %v660_v24, %v660_v24 }
 0x28c   : > { %v664_v26 = vsel %vm663_vm3, %v662_v25, 0.0 }
 0x28d   : > { %665 = vadd.xlane.f32.xlu0 %v664_v26 }
 0x300   : > { %v666_v27 = vpop.xlane.xlu0 %665 }
 0x301   : > { %v667_v28 = vmax.f32 %v666_v27, 1e-24 }
 0x303   : > { %796 = vrsqrt.f32 %v667_v28  ;;  %vm674_vm5 = vweird.f32 %v667_v28 }
 0x309   : > { %v797_v29 = vpop.eup %796 }
 0x30a   : > { %v669_v30 = vmul.f32 %v797_v29, %v667_v28  ;;  %vm675_vm4 = vweird.f32 %v797_v29 }
 0x30b   : > { %vm676_vm6 = vmor %vm674_vm5, %vm675_vm4 }
 0x30c   : > { %v670_v31 = vmul.f32 %v797_v29, %v669_v30 }
 0x30e   : > { %v671_v32 = vmul.f32 0.5, %v670_v31 }
 0x310   : > { %v672_v33 = vsub.f32 1.5, %v671_v32 }
 0x312   : > { %v673_v34 = vmul.f32 %v797_v29, %v672_v33 }
 0x314   : > { %v677_v35 = vsel %vm676_vm6, %v797_v29, %v673_v34 }
 0x315   : > { %v678_v36 = vmul.f32 %v677_v35, %v660_v24 }
 0x317   : > { %679 = vst [vmem:[%s276_s21] sm:$0x1] %v678_v36 }
 0x318 PF: > { %s17_s24 = sadd.s32 1, %s804_s24  }
 0x319   : > { %p14_p5 = scmp.ge.s32.totalorder %s17_s24, 6  }
 0x31b   :  { %16 = sbr.rel (!%p14_p5) target bundleno = 1 (0x1), region = 78 }

</bundles_post_ra>
